<compile_context>
chip_gen: v5e
topology: v5e:2x2
jax: 0.10.0
libtpu: 0.0.40
codegen_flags: <defaults>
</compile_context>

<pallas_src>
import functools

import jax
import jax.numpy as jnp
from jax import lax
from jax.experimental import pallas as pl
from jax.experimental.pallas import tpu as pltpu


def _round_up(x, m):
    return (x + m - 1) // m * m


# -----------------------------------------------------------------------------
# Fused matmul + bias + ReLU Pallas kernel.  Conv layers become matmuls via a
# bf16 valid-rows im2col done in the wrapper; the full K reduction happens in
# one dot per grid step -> max MXU K utilization, no accumulator scratch.
# -----------------------------------------------------------------------------
def _matmul_bias_act_kernel(x_ref, w_ref, b_ref, o_ref, *, relu):
    # x_ref: (tm, K) bf16   w_ref: (K, tn) bf16   b_ref: (1, tn) f32
    acc = jnp.dot(x_ref[...], w_ref[...], preferred_element_type=jnp.float32)
    acc = acc + b_ref[...]
    if relu:
        acc = jnp.maximum(acc, 0.0)
    o_ref[...] = acc.astype(o_ref.dtype)


def _pick_tm(m, n_blocks, max_tm=1024):
    mp = _round_up(m, 8)
    tm = min(mp, max_tm)
    # keep >= 2 total grid blocks so the second TensorCore (megacore / v7x)
    # never idles
    while n_blocks * pl.cdiv(mp, tm) < 2 and tm > 8:
        tm = max(8, _round_up(tm // 2, 8))
    return tm


def matmul_bias_relu(a, w, b, *, relu=True, out_dtype=jnp.bfloat16):
    """(M, K) bf16 @ (K, N) bf16 + bias (1, N) f32 [-> ReLU] -> (M, N)."""
    M, K = a.shape
    Kw, N = w.shape
    assert K == Kw, (K, Kw)
    tn = min(256, N)                       # 256-wide MXU on v6e/v7x
    assert N % tn == 0
    n_blocks = N // tn
    tm = _pick_tm(M, n_blocks)
    mp = _round_up(M, tm)
    if mp != M:
        a = jnp.pad(a, ((0, mp - M), (0, 0)))
    m_blocks = mp // tm

    out = pl.pallas_call(
        functools.partial(_matmul_bias_act_kernel, relu=relu),
        out_shape=jax.ShapeDtypeStruct((mp, N), out_dtype),
        grid_spec=pltpu.PrefetchScalarGridSpec(
            num_scalar_prefetch=0,
            grid=(m_blocks, n_blocks),
            in_specs=[
                pl.BlockSpec((tm, K), lambda i, j: (i, 0)),   # act rows streamed
                pl.BlockSpec((K, tn), lambda i, j: (0, j)),   # weight cols streamed
                pl.BlockSpec((1, tn), lambda i, j: (0, j)),
            ],
            out_specs=pl.BlockSpec((tm, tn), lambda i, j: (i, j)),
        ),
        compiler_params=pltpu.CompilerParams(
            dimension_semantics=("parallel", "parallel"),
            vmem_limit_bytes=32 * 1024 * 1024),
    )(a, w, b)
    return out[:M] if mp != M else out


# -----------------------------------------------------------------------------
# Conv3d(3x3x3, pad=1) + bias + ReLU  =  bf16 valid-rows im2col + fused matmul.
# -----------------------------------------------------------------------------
def _im2col_3x3x3(x):
    """(N, D, H, W, C) -> (N*D*H*W, 27*C) 'same' 3x3x3 patches (zero padded).

    Patch order is (kd, kh, kw) major with channels innermost, matching the
    weight row order produced by _conv_params.
    """
    N, D, H, W, C = x.shape
    xp = jnp.pad(x, ((0, 0), (1, 1), (1, 1), (1, 1), (0, 0)))
    patches = [xp[:, kd:kd + D, kh:kh + H, kw:kw + W, :]
               for kd in range(3) for kh in range(3) for kw in range(3)]
    a = jnp.stack(patches, axis=4)                  # (N, D, H, W, 27, C)
    return a.reshape(N * D * H * W, 27 * C)


def conv3d_relu(x, w, b):
    """3x3x3 'same' Conv3d + bias + ReLU; returns bf16 channels-last output.

    x: (N, D, H, W, C)
    w: (27*cin, Cout) bf16, rows ordered (kd, kh, kw, cin) (cin padded to 8
       for conv1), i.e. torch_weight.permute(2, 3, 4, 1, 0).reshape(-1, Cout).
    b: (1, Cout) f32
    """
    N, D, H, W, C = x.shape
    cout = w.shape[1]
    cin = w.shape[0] // 27
    x = x.astype(jnp.bfloat16)
    if C < cin:                                      # conv1: 3 -> 8 channel pad
        x = jnp.pad(x, ((0, 0),) * 4 + ((0, cin - C),))
    a = _im2col_3x3x3(x)                             # (N*D*H*W, 27*cin) bf16
    out = matmul_bias_relu(a, w, b)                  # valid rows only, bf16
    return out.reshape(N, D, H, W, cout)
    # TODO(synk): fuse conv pairs (3a+3b, 4a+4b, 5a+5b) into one pallas_call or
    # cross-call-prefetch the next layer's first weight block to hide the
    # prologue weight DMA of the HBM-bound 512-channel layers.
    # TODO(synk): int8/fp8 per-output-channel weight quantization would halve
    # the dominant weight-HBM bytes of conv4b/5a/5b; skipped to keep the
    # module's (bf16-level) numerics.


# -----------------------------------------------------------------------------
# MaxPool3d (kernel == stride, floor mode, -inf padding) -- cheap XLA glue.
# TODO(synk): could be fused into the matmul epilogue (lower priority; small).
# -----------------------------------------------------------------------------
def maxpool3d(x, kernel, padding=(0, 0, 0)):
    kd, kh, kw = kernel
    pd, ph, pw = padding
    init = jnp.asarray(-jnp.inf, dtype=x.dtype)
    return lax.reduce_window(
        x, init, lax.max,
        window_dimensions=(1, kd, kh, kw, 1),
        window_strides=(1, kd, kh, kw, 1),
        padding=((0, 0), (pd, pd), (ph, ph), (pw, pw), (0, 0)))


# -----------------------------------------------------------------------------
# Fused head: fc0+ReLU -> [concat clin] -> fc1+ReLU -> logits(zero-init)+Sigmoid
# One tiny single-block Pallas kernel; the clin concat is folded in by
# splitting fc1's weight into its x / clin row blocks.
# -----------------------------------------------------------------------------
def _head_kernel(x_ref, clin_ref, w0_ref, b0_ref, w1x_ref, w1c_ref, b1_ref,
                 w2_ref, b2_ref, o_ref):
    h0 = jnp.dot(x_ref[...], w0_ref[...], preferred_element_type=jnp.float32)
    h0 = jnp.maximum(h0 + b0_ref[...], 0.0)                         # fc0 + ReLU
    h1 = (jnp.dot(h0, w1x_ref[...], preferred_element_type=jnp.float32)
          + jnp.dot(clin_ref[...], w1c_ref[...], preferred_element_type=jnp.float32))
    h1 = jnp.maximum(h1 + b1_ref[...], 0.0)                         # fc1 + ReLU
    z = jnp.dot(h1, w2_ref[...], preferred_element_type=jnp.float32) + b2_ref[...]
    o_ref[...] = 1.0 / (1.0 + jnp.exp(-z))                          # Sigmoid


def head_forward(x, clin, p):
    B = x.shape[0]
    out_size = p["logits"][0].shape[1]
    args = (x, clin, p["fc0"][0], p["fc0"][1], p["fc1_x"], p["fc1_c"], p["fc1_b"],
            p["logits"][0], p["logits"][1])
    in_specs = [pl.BlockSpec(a.shape, lambda i: (0, 0)) for a in args]
    return pl.pallas_call(
        _head_kernel,
        out_shape=jax.ShapeDtypeStruct((B, out_size), jnp.float32),
        grid_spec=pltpu.PrefetchScalarGridSpec(
            num_scalar_prefetch=0,
            grid=(1,),
            in_specs=in_specs,
            out_specs=pl.BlockSpec((B, out_size), lambda i: (0, 0)),
        ),
    )(*args)


# -----------------------------------------------------------------------------
# Parameters (deterministic init, PyTorch-default-like uniform(-1/sqrt(fan_in)))
# Conv weights are pre-reordered, channel-padded and pre-cast to bf16 at init.
# -----------------------------------------------------------------------------
def _conv_params(key, cin, cout):
    cin_p = _round_up(cin, 8)
    fan_in = cin * 27
    bound = 1.0 / (fan_in ** 0.5)
    k1, k2 = jax.random.split(key)
    w = jax.random.uniform(k1, (27, cin, cout), jnp.float32, -bound, bound)
    w = jnp.pad(w, ((0, 0), (0, cin_p - cin), (0, 0)))       # zero padded channels
    w = w.reshape(27 * cin_p, cout).astype(jnp.bfloat16)     # pre-cast once
    b = jax.random.uniform(k2, (1, cout), jnp.float32, -bound, bound)
    return w, b


def _linear_params(key, fin, fout):
    bound = 1.0 / (fin ** 0.5)
    k1, k2 = jax.random.split(key)
    w = jax.random.uniform(k1, (fin, fout), jnp.float32, -bound, bound)
    b = jax.random.uniform(k2, (1, fout), jnp.float32, -bound, bound)
    return w, b


def make_params(key, conv_fc_size=1024, conv_head_units=64, cat_size=4,
                surv_head_units=32, output_size=8):
    params = {}
    conv_cfg = [("conv1", 3, 64), ("conv2", 64, 128),
                ("conv3a", 128, 256), ("conv3b", 256, 256),
                ("conv4a", 256, 512), ("conv4b", 512, 512),
                ("conv5a", 512, 512), ("conv5b", 512, 512)]
    keys = jax.random.split(key, len(conv_cfg) + 2)
    for k, (name, cin, cout) in zip(keys, conv_cfg):
        params[name] = _conv_params(k, cin, cout)
    # conv_head: fc0 = Linear(2*512, 64) + ReLU   (dense_drop = 0 -> no dropout)
    params["fc0"] = _linear_params(keys[len(conv_cfg)], conv_fc_size, conv_head_units)
    # surv_head: fc1 = Linear(64 + cat_size, 32) + ReLU, split into [x | clin] rows
    w1, b1 = _linear_params(keys[len(conv_cfg) + 1],
                            conv_head_units + cat_size, surv_head_units)
    params["fc1_x"] = w1[:conv_head_units]
    params["fc1_c"] = w1[conv_head_units:]
    params["fc1_b"] = b1
    # logits: zero-initialized exactly as in the module ('non_prop' branch)
    params["logits"] = (jnp.zeros((surv_head_units, output_size), jnp.float32),
                        jnp.zeros((1, output_size), jnp.float32))
    return params
    # TODO(synk): nn.Dropout layers are omitted because args set dense_drop=0
    # (matching the reference construction); non-zero drop would need
    # pltpu.prng_random_bits-based masking.


# -----------------------------------------------------------------------------
# Forward pass (mirrors Model.forward)
# -----------------------------------------------------------------------------
def base_forward(x, p):
    x = conv3d_relu(x, *p["conv1"])
    x = maxpool3d(x, (1, 2, 2))
    x = conv3d_relu(x, *p["conv2"])
    x = maxpool3d(x, (2, 2, 2))
    x = conv3d_relu(x, *p["conv3a"])
    x = conv3d_relu(x, *p["conv3b"])
    x = maxpool3d(x, (2, 2, 2))
    x = conv3d_relu(x, *p["conv4a"])
    x = conv3d_relu(x, *p["conv4b"])
    x = maxpool3d(x, (2, 2, 2))
    x = conv3d_relu(x, *p["conv5a"])
    x = conv3d_relu(x, *p["conv5b"])
    x = maxpool3d(x, (2, 2, 2), padding=(0, 1, 1))
    return x.reshape(x.shape[0], -1)          # Flatten(start_dim=1); spatial is (1,1,1)


def model_forward(ct, pt, clin, params):
    B = ct.shape[0]
    # ct and pt share the base weights -> run them as one batch (half the launches).
    feats = base_forward(jnp.concatenate([ct, pt], axis=0), params)      # (2B, 512)
    x = jnp.concatenate([feats[:B], feats[B:]], axis=-1)                 # cat((ct,pt),-1)
    return head_forward(x.astype(jnp.float32), clin, params)


# -----------------------------------------------------------------------------
# Plain-JAX f32 reference (used only to validate the fused conv matmul kernel)
# -----------------------------------------------------------------------------
def _conv_reference(x, w, b):
    N, D, H, W, C = x.shape
    cin = w.shape[0] // 27
    if C < cin:
        x = jnp.pad(x, ((0, 0),) * 4 + ((0, cin - C),))
    a = _im2col_3x3x3(x.astype(jnp.float32))
    out = jnp.maximum(a @ w.astype(jnp.float32) + b, 0.0)
    return out.reshape(N, D, H, W, w.shape[1])


# -----------------------------------------------------------------------------
if __name__ == "__main__":
    # args (conceptual): input_size=(3,16,16,16), conv_head.dense_units=[64],
    # surv_head.dense_units=[32], out_act='non_prop', output_size=8, cat_size=4
    B, C_IN, D, H, W = 2, 3, 16, 16, 16
    CAT_SIZE, OUTPUT_SIZE = 4, 8

    key = jax.random.PRNGKey(0)
    k_ct, k_pt, k_clin, k_params, k_chk = jax.random.split(key, 5)

    # Inputs built channels-last; PyTorch equivalent would be the NCDHW permute.
    ct = jax.random.normal(k_ct, (B, D, H, W, C_IN), jnp.float32)
    pt = jax.random.normal(k_pt, (B, D, H, W, C_IN), jnp.float32)
    clin = jax.random.normal(k_clin, (B, CAT_SIZE), jnp.float32)

    params = make_params(k_params, conv_fc_size=2 * 512,
                         conv_head_units=64, cat_size=CAT_SIZE,
                         surv_head_units=32, output_size=OUTPUT_SIZE)

    # --- self-check: fused conv kernel vs. plain-JAX im2col reference --------
    # Reference runs in f32 on the bf16-rounded input/weights; kernel output
    # is bf16, so tolerances are at bf16 level.
    x_chk = jax.random.normal(k_chk, (2, 4, 4, 4, 64), jnp.float32)
    w_chk, b_chk = params["conv2"]
    got = conv3d_relu(x_chk, w_chk, b_chk).astype(jnp.float32)
    want = _conv_reference(x_chk.astype(jnp.bfloat16).astype(jnp.float32),
                           w_chk, b_chk)
    assert jnp.allclose(got, want, atol=2e-2, rtol=2e-2), \
        float(jnp.max(jnp.abs(got - want)))

    # --- full forward ---------------------------------------------------------
    fwd = jax.jit(model_forward)
    out = jax.block_until_ready(fwd(ct, pt, clin, params))

    assert out.shape == (B, OUTPUT_SIZE), out.shape
    assert bool(jnp.all(jnp.isfinite(out)))
    # zero-initialized logits (faithful to __init__) -> sigmoid(0) == 0.5
    assert bool(jnp.allclose(out, 0.5))
    print("KERNEL_OK")
</pallas_src>

<mosaic_0001>
module attributes {stable_mosaic.version = 11 : i64} {
  func.func @_matmul_bias_act_kernel(%arg0: i32, %arg1: i32, %arg2: memref<64x1728xbf16, #tpu.memory_space<vmem>>, %arg3: memref<1728x128xbf16, #tpu.memory_space<vmem>>, %arg4: memref<1x128xf32, #tpu.memory_space<vmem>>, %arg5: memref<64x128xbf16, #tpu.memory_space<vmem>>) attributes {dimension_semantics = [#tpu.dimension_semantics<parallel>, #tpu.dimension_semantics<parallel>], iteration_bounds = array<i64: 2, 1>, scalar_prefetch = 0 : i64, scratch_operands = 0 : i64, tpu.core_type = #tpu.core_type<tc>, window_params = [{transform_indices = @transform_0, window_bounds = array<i64: 64, 1728>}, {transform_indices = @transform_1, window_bounds = array<i64: 1728, 128>}, {transform_indices = @transform_2, window_bounds = array<i64: 1, 128>}, {transform_indices = @transform_3, window_bounds = array<i64: 64, 128>}]} {
    %c0 = arith.constant 0 : index
    %c0_0 = arith.constant 0 : index
    %0 = vector.load %arg2[%c0, %c0_0] : memref<64x1728xbf16, #tpu.memory_space<vmem>>, vector<64x1728xbf16>
    %c0_1 = arith.constant 0 : index
    %c0_2 = arith.constant 0 : index
    %1 = vector.load %arg3[%c0_1, %c0_2] : memref<1728x128xbf16, #tpu.memory_space<vmem>>, vector<1728x128xbf16>
    %cst = arith.constant dense<0.000000e+00> : vector<64x128xf32>
    %2 = tpu.matmul %0, %1, %cst {dimension_numbers = #tpu.dot_dimension_numbers<[1], [0], [0], [1], [0, 0, 1, 1], [], []>} : vector<64x1728xbf16>, vector<1728x128xbf16>, vector<64x128xf32> -> vector<64x128xf32>
    %c0_3 = arith.constant 0 : index
    %c0_4 = arith.constant 0 : index
    %3 = vector.load %arg4[%c0_3, %c0_4] : memref<1x128xf32, #tpu.memory_space<vmem>>, vector<1x128xf32>
    %4 = vector.broadcast %3 : vector<1x128xf32> to vector<64x128xf32>
    %5 = arith.addf %2, %4 : vector<64x128xf32>
    %cst_5 = arith.constant 0.000000e+00 : f32
    %6 = vector.broadcast %cst_5 : f32 to vector<64x128xf32>
    %7 = arith.maximumf %5, %6 : vector<64x128xf32>
    %8 = arith.truncf %7 : vector<64x128xf32> to vector<64x128xbf16>
    %c0_6 = arith.constant 0 : index
    %c0_7 = arith.constant 0 : index
    %9 = vector.load %arg5[%c0_6, %c0_7] : memref<64x128xbf16, #tpu.memory_space<vmem>>, vector<64x128xbf16>
    tpu.vector_store %arg5[%c0_6, %c0_7], %8 {strides = array<i32>} : memref<64x128xbf16, #tpu.memory_space<vmem>>, vector<64x128xbf16>,
    return
  }
  func.func @transform_0(%arg0: i32, %arg1: i32) -> (i32, i32) {
    %c0_i32 = arith.constant 0 : i32
    %c0_i32_0 = arith.constant 0 : i32
    return %arg0, %c0_i32 : i32, i32
  }
  func.func @transform_1(%arg0: i32, %arg1: i32) -> (i32, i32) {
    %c0_i32 = arith.constant 0 : i32
    %c0_i32_0 = arith.constant 0 : i32
    return %c0_i32, %arg1 : i32, i32
  }
  func.func @transform_2(%arg0: i32, %arg1: i32) -> (i32, i32) {
    %c0_i32 = arith.constant 0 : i32
    %c0_i32_0 = arith.constant 0 : i32
    return %c0_i32, %arg1 : i32, i32
  }
  func.func @transform_3(%arg0: i32, %arg1: i32) -> (i32, i32) {
    %c0_i32 = arith.constant 0 : i32
    return %arg0, %arg1 : i32, i32
  }
}

</mosaic_0001>

<bundles_post_ra>
// kernel: tpu_custom_call.1
= control target key start
LH: loop header
LB: loop body
LE: loop exit
PB: predicated region body
PF: predicated region fallthrough
CT: control target
= control target key end

     0   :  { %8 = vsyncpa [#allocation3], 0  ;;  %s3651_s0 = inlined_call_operand.vmem [shape: bf16[128,1728], index: 0, kind: input, shape index: {}]   ;;  %s3652_s1 = inlined_call_operand.vmem [shape: bf16[1728,128], index: 1, kind: input, shape index: {}]   ;;  %s3653_s2 = inlined_call_operand.vmem [shape: f32[1,128], index: 2, kind: input, shape index: {}]   ;;  %s3654_s3 = inlined_call_operand.hbm [shape: bf16[128,128], index: 3, kind: output, shape index: {}]  }
   0x1   :  { %10 = vsyncpa [#allocation3 + $0x1], 0  ;;  %s3020_s12 = smov 0   ;;  %s3022_s13 = smov 0  }
   0x2   :  { %s3024_s14 = smov 0   ;;  %s3026_s15 = smov 0  }
   0x3   :  { %s3028_s16 = smov 0   ;;  %s3030_s17 = smov 0  }
   0x4 LB: > { %s1980_s18 = sadd.s32 4294967295, %s2996_s17   ;;  %s1981_s19 = sadd.s32 4294967294, %s2996_s17   ;;  %s2996_s17 = sphi %s3030_s17, %s16_s17   ;;  %s2992_s16 = sphi %s3028_s16, %s3661_s16   ;;  %s2988_s15 = sphi %s3026_s15, %s3660_s15   ;;  %s2984_s14 = sphi %s3024_s14, %s3659_s14   ;;  %s2980_s13 = sphi %s3022_s13, %s3658_s13   ;;  %s2976_s12 = sphi %s3020_s12, %s3657_s12  }
   0x5   : > { %s28_s20 = sadd.s32 1, %s2992_s16  ;;  %s115_s21 = sadd.s32 1, %s2984_s14 }
   0x6   : > { %p30_p0 = scmp.ge.s32.totalorder %s28_s20, 2  ;;  %p125_p1 = scmp.ne.s32.totalorder %s2984_s14, %s2980_s13 }
   0x7   : > { %p126_p2 = scmp.eq.s32.totalorder %s1980_s18, 1  ;;  %p131_p3 = scmp.ne.s32.totalorder %s2980_s13, %s2976_s12 }
   0x8   : > { %s3663_s20 = smov (%p30_p0, %s28_s20), 0  ;;  %p132_p5 = scmp.eq.s32.totalorder %s1981_s19, 1 }
   0x9   : > { %p3060_p4 = por %p126_p2, %p125_p1  ;;  %s110_s23 = ssub.s32 %s2992_s16, %s3663_s20 }
   0xa   : > { %p1986_p6 = scmp.ge.s32.totalorder %s2996_s17, 1  ;;  %p113_p7 = scmp.eq.s32.totalorder %s110_s23, 0 }
   0xb   : > { %p3067_p8 = por %p132_p5, %p131_p3  ;;  %p173_p9 = scmp.lt.s32.totalorder %s2996_s17, 3 }
   0xc   : > { %s3073_s25 = scalar_select %p113_p7, %s2984_s14, %s115_s21  }
   0xd   : > { %p174_p10 = pnand %p1986_p6, %p173_p9 }
   0xe   : > { %s1988_s11 = sshll.u32 (!%p174_p10), %s2988_s15, 3  ;;  %s2938_s8 = scalar_lea.hbm (!%p174_p10), %s3654_s3, 64 }
   0xf   : > { %177 = sbr.rel (%p174_p10) target bundleno = 416 (0x1a0), region = 32  ;;  %p206_p11 = scmp.lt.s32.totalorder (!%p174_p10), %s1988_s11, 15 }
  0x14   : > { %v2718_v0 = vld [vmem:[%s3652_s1 + $0x38] sm:$0xff]  ;;  %v2717_v2 = vld [vmem:[%s3652_s1 + $0x30] sm:$0xff]  ;;  %v2716_v4 = vld [vmem:[%s3652_s1 + $0x28] sm:$0xff]  ;;  %s3665_s11 = smov (!%p206_p11, %s1988_s11), 15  ;;  %vm1421_vm0 = vcmask 523264  }
  0x15   : > { %v2726_v1 = vld [vmem:[%s3652_s1 + $0x78] sm:$0xff]  ;;  %2843 = vmatpush.bf16.msra.mxu2 %v2718_v0  ;;  %v2725_v3 = vld [vmem:[%s3652_s1 + $0x70] sm:$0xff]  ;;  %1434 = vmatpush.bf16.msra.mxu0 %v2718_v0  ;;  %v2724_v5 = vld [vmem:[%s3652_s1 + $0x68] sm:$0xff]  ;;  %s2859_s7 = smul.u32 56, %s3665_s11  ;;  %s2819_s11 = sshll.u32 %s2988_s15, 5 }
  0x16   : > { %2851 = vmatpush.bf16.msra.mxu3 %v2726_v1  ;;  %1463 = vmatpush.bf16.msra.mxu1 %v2726_v1  ;;  %v2715_v6 = vld [vmem:[%s3652_s1 + $0x20] sm:$0xff]  ;;  %v2714_v8 = vld [vmem:[%s3652_s1 + $0x18] sm:$0xff]  ;;  %v2713_v10 = vld [vmem:[%s3652_s1 + $0x10] sm:$0xff]  ;;  %s1877_s28 = scalar_lea.hbm %s3654_s3, %s2819_s11 }
  0x17   : > { %v2723_v7 = vld [vmem:[%s3652_s1 + $0x60] sm:$0xff]  ;;  %v2722_v9 = vld [vmem:[%s3652_s1 + $0x58] sm:$0xff]  ;;  %v2721_v11 = vld [vmem:[%s3652_s1 + $0x50] sm:$0xff]  ;;  %s3121_s23 = scalar_lea.vmem %s3651_s0, %s2859_s7  ;;  %s1880_s30 = sshll.u32 %s1877_s28, 4  ;;  %s1881_s30 = int_to_ptr.hbm [resolvable:$true] %s1880_s30 }
  0x18   : > { %v2712_v12 = vld [vmem:[%s3652_s1 + $0x8] sm:$0xff]  ;;  %v2711_v14 = vld [vmem:[%s3652_s1] sm:$0xff]  ;;  %v2690_v17 = vld [vmem:[%s3121_s23 + $0x114] sm:$0xf0]  ;;  %s2932_s4 = sshra.s32 %s1881_s30, 4  ;;  %s2933_s4 = int_to_ptr.hbm [resolvable:$true] %s2932_s4 }
  0x19   : > { %2844 = vmatpush.bf16.msra.mxu2 %v2717_v2  ;;  %1435 = vmatpush.bf16.msra.mxu0 %v2717_v2  ;;  %v2720_v13 = vld [vmem:[%s3652_s1 + $0x48] sm:$0xff]  ;;  %v2719_v15 = vld [vmem:[%s3652_s1 + $0x40] sm:$0xff]  ;;  %v2106_v19 = vld [vmem:[%s3121_s23 + $0x118] sm:$0xf0]  ;;  %s2934_s5 = scalar_lea.hbm %s2933_s4, 32  ;;  %p2939_p1 = scmp.lt.s32.totalorder %s2933_s4, %s3654_s3 }
  0x1a   : > { %2852 = vmatpush.bf16.msra.mxu3 %v2725_v3  ;;  %1464 = vmatpush.bf16.msra.mxu1 %v2725_v3  ;;  %v2104_v16 = vld [vmem:[%s3121_s23 + $0xe0] sm:$0xf]  ;;  %v2683_v18 = vld [vmem:[%s3121_s23 + $0xe4] sm:$0xf]  ;;  %v2734_v20 = vld [vmem:[%s3652_s1 + $0xb8] sm:$0xff]  ;;  %p2935_p12 = scmp.ne.s32.totalorder %s2933_s4, %s2934_s5  ;;  %p2940_p2 = scmp.lt.s32.totalorder %s2938_s8, %s2934_s5 }
  0x1b   : > { %v1992_v21 = vld [vmem:[%s3121_s23] sm:$0xf]  ;;  %v2662_v22 = vld [vmem:[%s3121_s23 + $0x34] sm:$0xf0]  ;;  %v2655_v24 = vld [vmem:[%s3121_s23 + $0x4] sm:$0xf]  ;;  %v2105_v26 = vor.u32 %v2690_v17, %v2104_v16  ;;  %v2109_v27 = vor.u32 %v2683_v18, %v2106_v19 }
  0x1c   : > { %v2742_v23 = vld [vmem:[%s3652_s1 + $0xf8] sm:$0xff]  ;;  %v1993_v28 = vor.u32 %v2662_v22, %v1992_v21  ;;  %v2733_v32 = vld [vmem:[%s3652_s1 + $0xb0] sm:$0xff]  ;;  %v2732_v36 = vld [vmem:[%s3652_s1 + $0xa8] sm:$0xff]  ;;  %p2936_p13 = pnand %p2935_p12, %p3060_p4  ;;  %p2941_p3 = por %p2940_p2, %p2939_p1 }
  0x1d   : > { %2845 = vmatpush.bf16.msra.mxu2 %v2716_v4  ;;  %1436 = vmatpush.bf16.msra.mxu0 %v2716_v4  ;;  %v1994_v25 = vld [vmem:[%s3121_s23 + $0x38] sm:$0xf0]  ;;  %v2741_v33 = vld [vmem:[%s3652_s1 + $0xf0] sm:$0xff]  ;;  %v2740_v37 = vld [vmem:[%s3652_s1 + $0xe8] sm:$0xff] }
  0x1e   : > { %2853 = vmatpush.bf16.msra.mxu3 %v2724_v5  ;;  %1465 = vmatpush.bf16.msra.mxu1 %v2724_v5  ;;  %v2758_v29 = vld [vmem:[%s3652_s1 + $0x178] sm:$0xff]  ;;  %v1997_v31 = vor.u32 %v2655_v24, %v1994_v25  ;;  %v2757_v34 = vld [vmem:[%s3652_s1 + $0x170] sm:$0xff]  ;;  %v2756_v38 = vld [vmem:[%s3652_s1 + $0x168] sm:$0xff]  ;;  %p2937_p0 = pneg %p2936_p13 }
  0x1f   : > { %v2750_v30 = vld [vmem:[%s3652_s1 + $0x138] sm:$0xff]  ;;  %v2749_v35 = vld [vmem:[%s3652_s1 + $0x130] sm:$0xff]  ;;  %v2748_v39 = vld [vmem:[%s3652_s1 + $0x128] sm:$0xff] }
  0x20   : > { %v2731_v40 = vld [vmem:[%s3652_s1 + $0xa0] sm:$0xff]  ;;  %v2160_v43 = vld [vmem:[%s3121_s23 + $0x150] sm:$0xf]  ;;  %v2704_v44 = vld [vmem:[%s3121_s23 + $0x184] sm:$0xf0]  ;;  %p2942_p5 = pnand %p2941_p3, %p2937_p0 }
  0x21   : > { %2846 = vmatpush.bf16.msra.mxu2 %v2715_v6  ;;  %1437 = vmatpush.bf16.msra.mxu0 %v2715_v6  ;;  %v2739_v41 = vld [vmem:[%s3652_s1 + $0xe0] sm:$0xff]  ;;  %v2697_v45 = vld [vmem:[%s3121_s23 + $0x154] sm:$0xf]  ;;  %v2162_v46 = vld [vmem:[%s3121_s23 + $0x188] sm:$0xf0]  ;;  %v2161_v54 = vor.u32 %v2704_v44, %v2160_v43 }
  0x22   : > { %2854 = vmatpush.bf16.msra.mxu3 %v2723_v7  ;;  %1466 = vmatpush.bf16.msra.mxu1 %v2723_v7  ;;  %v2747_v42 = vld [vmem:[%s3652_s1 + $0x120] sm:$0xff]  ;;  %v2730_v48 = vld [vmem:[%s3652_s1 + $0x98] sm:$0xff]  ;;  %v2048_v49 = vld [vmem:[%s3121_s23 + $0x70] sm:$0xf]  ;;  %v2165_v55 = vor.u32 %v2697_v45, %v2162_v46 }
  0x23   : > { %v2755_v47 = vld [vmem:[%s3652_s1 + $0x160] sm:$0xff]  ;;  %v2676_v50 = vld [vmem:[%s3121_s23 + $0xa4] sm:$0xf0]  ;;  %v2738_v51 = vld [vmem:[%s3652_s1 + $0xd8] sm:$0xff] }
  0x24   : > { %v2669_v52 = vld [vmem:[%s3121_s23 + $0x74] sm:$0xf]  ;;  %v2050_v53 = vld [vmem:[%s3121_s23 + $0xa8] sm:$0xf0]  ;;  %v2049_v56 = vor.u32 %v2676_v50, %v2048_v49  ;;  %v2754_v57 = vld [vmem:[%s3652_s1 + $0x158] sm:$0xff] }
  0x25   : > { %2847 = vmatpush.bf16.msra.mxu2 %v2714_v8  ;;  %1438 = vmatpush.bf16.msra.mxu0 %v2714_v8  ;;  %v2746_v58 = vld [vmem:[%s3652_s1 + $0x118] sm:$0xff]  ;;  %v2053_v59 = vor.u32 %v2669_v52, %v2050_v53  ;;  %v2729_v60 = vld [vmem:[%s3652_s1 + $0x90] sm:$0xff]  ;;  %v2728_v0 = vld [vmem:[%s3652_s1 + $0x88] sm:$0xff] }
  0x26   : > { %2855 = vmatpush.bf16.msra.mxu3 %v2722_v9  ;;  %1467 = vmatpush.bf16.msra.mxu1 %v2722_v9  ;;  %v2737_v61 = vld [vmem:[%s3652_s1 + $0xd0] sm:$0xff]  ;;  %v2736_v1 = vld [vmem:[%s3652_s1 + $0xc8] sm:$0xff]  ;;  %v2727_v4 = vld [vmem:[%s3652_s1 + $0x80] sm:$0xff] }
  0x27   : > { %v2753_v62 = vld [vmem:[%s3652_s1 + $0x150] sm:$0xff]  ;;  %v2752_v2 = vld [vmem:[%s3652_s1 + $0x148] sm:$0xff]  ;;  %v2735_v5 = vld [vmem:[%s3652_s1 + $0xc0] sm:$0xff] }
  0x28   : > { %v2745_v63 = vld [vmem:[%s3652_s1 + $0x110] sm:$0xff]  ;;  %v2744_v3 = vld [vmem:[%s3652_s1 + $0x108] sm:$0xff]  ;;  %v2743_v7 = vld [vmem:[%s3652_s1 + $0x100] sm:$0xff] }
  0x29   : > { %2848 = vmatpush.bf16.msra.mxu2 %v2713_v10  ;;  %1439 = vmatpush.bf16.msra.mxu0 %v2713_v10  ;;  %v2000_v6 = vld [vmem:[%s3121_s23 + $0x8] sm:$0xf]  ;;  %v2663_v8 = vld [vmem:[%s3121_s23 + $0x3c] sm:$0xf0]  ;;  %v2766_v9 = vld [vmem:[%s3652_s1 + $0x1b8] sm:$0xff] }
  0x2a   : > { %2856 = vmatpush.bf16.msra.mxu3 %v2721_v11  ;;  %1468 = vmatpush.bf16.msra.mxu1 %v2721_v11  ;;  %v2774_v10 = vld [vmem:[%s3652_s1 + $0x1f8] sm:$0xff]  ;;  %v2656_v11 = vld [vmem:[%s3121_s23 + $0xc] sm:$0xf]  ;;  %v2657_v17 = vld [vmem:[%s3121_s23 + $0x14] sm:$0xf] }
  0x2b   : > { %v2790_v16 = vld [vmem:[%s3652_s1 + $0x278] sm:$0xff]  ;;  %v2010_v18 = vld [vmem:[%s3121_s23 + $0x48] sm:$0xf0]  ;;  %v2773_v25 = vld [vmem:[%s3652_s1 + $0x1f0] sm:$0xff] }
  0x2c   : > { %v2782_v19 = vld [vmem:[%s3652_s1 + $0x238] sm:$0xff]  ;;  %v2013_v24 = vor.u32 %v2657_v17, %v2010_v18  ;;  %v2671_v43 = vld [vmem:[%s3121_s23 + $0x84] sm:$0xf]  ;;  %v2769_v53 = vld [vmem:[%s3652_s1 + $0x1d0] sm:$0xff] }
  0x2d   : > { %2849 = vmatpush.bf16.msra.mxu2 %v2712_v12  ;;  %1440 = vmatpush.bf16.msra.mxu0 %v2712_v12  ;;  %v2002_v12 = vld [vmem:[%s3121_s23 + $0x40] sm:$0xf0]  ;;  %v2770_v44 = vld [vmem:[%s3652_s1 + $0x1d8] sm:$0xff] }
  0x2e   : > { %2857 = vmatpush.bf16.msra.mxu3 %v2720_v13  ;;  %1469 = vmatpush.bf16.msra.mxu1 %v2720_v13  ;;  %v2751_v13 = vld [vmem:[%s3652_s1 + $0x140] sm:$0xff]  ;;  %v2005_v21 = vor.u32 %v2656_v11, %v2002_v12  ;;  %v2066_v45 = vld [vmem:[%s3121_s23 + $0xb8] sm:$0xf0]  ;;  %v2168_v18 = vld [vmem:[%s3121_s23 + $0x158] sm:$0xf] }
  0x2f   : > { %v2778_v46 = vld [vmem:[%s3652_s1 + $0x218] sm:$0xff]  ;;  %v2069_v52 = vor.u32 %v2671_v43, %v2066_v45  ;;  %v2783_v11 = vld [vmem:[%s3652_s1 + $0x240] sm:$0xff] }
  0x30   : > { %v2798_v12 = vld [vmem:[%s3652_s1 + $0x2b8] sm:$0xff]  ;;  %v2659_v43 = vld [vmem:[%s3121_s23 + $0x24] sm:$0xf] }
  0x31   : > { %2850 = vmatpush.bf16.msra.mxu2 %v2711_v14  ;;  %1441 = vmatpush.bf16.msra.mxu0 %v2711_v14  ;;  %v2008_v14 = vld [vmem:[%s3121_s23 + $0x10] sm:$0xf]  ;;  %v2818_v17 = vld [vmem:[%s3652_s1 + $0x358] sm:$0xff] }
  0x32   : > { %2858 = vmatpush.bf16.msra.mxu3 %v2719_v15  ;;  %1470 = vmatpush.bf16.msra.mxu1 %v2719_v15  ;;  %v2664_v15 = vld [vmem:[%s3121_s23 + $0x44] sm:$0xf0] }
  0x33   : > { %v2009_v22 = vor.u32 %v2664_v15, %v2008_v14  ;;  %v2797_v14 = vld [vmem:[%s3652_s1 + $0x2b0] sm:$0xff]  ;;  %v2814_v15 = vld [vmem:[%s3652_s1 + $0x338] sm:$0xff] }
  0x34   : > { %1452 = vmatmul.bf16.vlgmr.msra.gmra.mxu2 %v2105_v26  ;;  %1442 = vmatmul.bf16.vlgmr.msra.gmra.mxu0 %v1993_v28  ;;  %v2781_v26 = vld [vmem:[%s3652_s1 + $0x230] sm:$0xff]  ;;  %v2764_v28 = vld [vmem:[%s3652_s1 + $0x1a8] sm:$0xff] }
  0x35   : > { %1492 = vmatpush.bf16.msrb.mxu2 %v2734_v20  ;;  %1481 = vmatmul.bf16.vlgmr.msra.gmra.mxu3 %v2109_v27  ;;  %v2001_v20 = vor.u32 %v2663_v8, %v2000_v6  ;;  %v2789_v27 = vld [vmem:[%s3652_s1 + $0x270] sm:$0xff]  ;;  %v2122_v6 = vld [vmem:[%s3121_s23 + $0x128] sm:$0xf0] }
  0x36   : > { %1521 = vmatpush.bf16.msrb.mxu3 %v2742_v23  ;;  %1579 = vmatpush.bf16.msrb.mxu1 %v2758_v29  ;;  %v2765_v23 = vld [vmem:[%s3652_s1 + $0x1b0] sm:$0xff]  ;;  %v2772_v29 = vld [vmem:[%s3652_s1 + $0x1e8] sm:$0xff] }
  0x37   : > { %1550 = vmatpush.bf16.msrb.mxu0 %v2750_v30  ;;  %1471 = vmatmul.bf16.vlgmr.msra.gmra.mxu1 %v1997_v31  ;;  %v2780_v30 = vld [vmem:[%s3652_s1 + $0x228] sm:$0xff] }
  0x38   : > { %v2788_v31 = vld [vmem:[%s3652_s1 + $0x268] sm:$0xff] }
  0x39   : > { %1493 = vmatpush.bf16.msrb.mxu2 %v2733_v32  ;;  %v2763_v32 = vld [vmem:[%s3652_s1 + $0x1a0] sm:$0xff] }
  0x3a   : > { %1522 = vmatpush.bf16.msrb.mxu3 %v2741_v33  ;;  %1580 = vmatpush.bf16.msrb.mxu1 %v2757_v34  ;;  %v2771_v33 = vld [vmem:[%s3652_s1 + $0x1e0] sm:$0xff] }
  0x3b   : > { %1551 = vmatpush.bf16.msrb.mxu0 %v2749_v35  ;;  %v2779_v34 = vld [vmem:[%s3652_s1 + $0x220] sm:$0xff] }
  0x3c   : > { %v2787_v35 = vld [vmem:[%s3652_s1 + $0x260] sm:$0xff] }
  0x3d   : > { %1494 = vmatpush.bf16.msrb.mxu2 %v2732_v36  ;;  %v2056_v36 = vld [vmem:[%s3121_s23 + $0x78] sm:$0xf] }
  0x3e   : > { %1523 = vmatpush.bf16.msrb.mxu3 %v2740_v37  ;;  %1581 = vmatpush.bf16.msrb.mxu1 %v2756_v38  ;;  %v2677_v37 = vld [vmem:[%s3121_s23 + $0xac] sm:$0xf0]  ;;  %v2670_v38 = vld [vmem:[%s3121_s23 + $0x7c] sm:$0xf] }
  0x3f   : > { %1552 = vmatpush.bf16.msrb.mxu0 %v2748_v39  ;;  %v2058_v39 = vld [vmem:[%s3121_s23 + $0xb0] sm:$0xf0] }
  0x40   : > { %v2061_v49 = vor.u32 %v2670_v38, %v2058_v39  ;;  %v2665_v38 = vld [vmem:[%s3121_s23 + $0x4c] sm:$0xf0]  ;;  %v2658_v39 = vld [vmem:[%s3121_s23 + $0x1c] sm:$0xf] }
  0x41   : > { %1495 = vmatpush.bf16.msrb.mxu2 %v2731_v40  ;;  %v2064_v40 = vld [vmem:[%s3121_s23 + $0x80] sm:$0xf] }
  0x42   : > { %1524 = vmatpush.bf16.msrb.mxu3 %v2739_v41  ;;  %1582 = vmatpush.bf16.msrb.mxu1 %v2755_v47  ;;  %v2762_v41 = vld [vmem:[%s3652_s1 + $0x198] sm:$0xff] }
  0x43   : > { %1553 = vmatpush.bf16.msrb.mxu0 %v2747_v42  ;;  %v2678_v42 = vld [vmem:[%s3121_s23 + $0xb4] sm:$0xf0] }
  0x44   : > { %1457 = vmatmul.bf16.gmra.mxu2 %v2161_v54  ;;  %1447 = vmatmul.bf16.gmra.mxu0 %v2049_v56  ;;  %v2786_v47 = vld [vmem:[%s3652_s1 + $0x258] sm:$0xff]  ;;  %v2065_v50 = vor.u32 %v2678_v42, %v2064_v40  ;;  %v2760_v54 = vld [vmem:[%s3652_s1 + $0x188] sm:$0xff]  ;;  %v2018_v40 = vld [vmem:[%s3121_s23 + $0x50] sm:$0xf0] }
  0x45   : > { %1496 = vmatpush.bf16.msrb.mxu2 %v2730_v48  ;;  %1486 = vmatmul.bf16.gmra.mxu3 %v2165_v55  ;;  %v2057_v48 = vor.u32 %v2677_v37, %v2056_v36  ;;  %v2777_v55 = vld [vmem:[%s3652_s1 + $0x210] sm:$0xff]  ;;  %v2768_v56 = vld [vmem:[%s3652_s1 + $0x1c8] sm:$0xff]  ;;  %v2016_v37 = vld [vmem:[%s3121_s23 + $0x18] sm:$0xf] }
  0x46   : > { %1525 = vmatpush.bf16.msrb.mxu3 %v2738_v51  ;;  %1583 = vmatpush.bf16.msrb.mxu1 %v2754_v57  ;;  %v2761_v51 = vld [vmem:[%s3652_s1 + $0x190] sm:$0xff]  ;;  %v2666_v42 = vld [vmem:[%s3121_s23 + $0x54] sm:$0xf0]  ;;  %v2017_v45 = vor.u32 %v2665_v38, %v2016_v37  ;;  %v2707_v38 = vld [vmem:[%s3121_s23 + $0x19c] sm:$0xf0] }
  0x47   : > { %1554 = vmatpush.bf16.msrb.mxu0 %v2746_v58  ;;  %1476 = vmatmul.bf16.gmra.mxu1 %v2053_v59  ;;  %v2785_v57 = vld [vmem:[%s3652_s1 + $0x250] sm:$0xff]  ;;  %v2776_v58 = vld [vmem:[%s3652_s1 + $0x208] sm:$0xff] }
  0x48   : > { %v2784_v59 = vld [vmem:[%s3652_s1 + $0x248] sm:$0xff]  ;;  %v2817_v36 = vld [vmem:[%s3652_s1 + $0x350] sm:$0xff] }
  0x49   : > { %1497 = vmatpush.bf16.msrb.mxu2 %v2729_v60  ;;  %v2759_v60 = vld [vmem:[%s3652_s1 + $0x180] sm:$0xff] }
  0x4a   : > { %1526 = vmatpush.bf16.msrb.mxu3 %v2737_v61  ;;  %1584 = vmatpush.bf16.msrb.mxu1 %v2753_v62  ;;  %v2767_v61 = vld [vmem:[%s3652_s1 + $0x1c0] sm:$0xff] }
  0x4b   : > { %1555 = vmatpush.bf16.msrb.mxu0 %v2745_v63  ;;  %v2775_v62 = vld [vmem:[%s3652_s1 + $0x200] sm:$0xff]  ;;  %v2112_v63 = vld [vmem:[%s3121_s23 + $0xe8] sm:$0xf] }
  0x4d   : > { %1498 = vmatpush.bf16.msrb.mxu2 %v2728_v0  ;;  %v2691_v0 = vld [vmem:[%s3121_s23 + $0x11c] sm:$0xf0] }
  0x4e   : > { %1527 = vmatpush.bf16.msrb.mxu3 %v2736_v1  ;;  %1585 = vmatpush.bf16.msrb.mxu1 %v2752_v2  ;;  %v2684_v1 = vld [vmem:[%s3121_s23 + $0xec] sm:$0xf]  ;;  %v2114_v2 = vld [vmem:[%s3121_s23 + $0x120] sm:$0xf0] }
  0x4f   : > { %1556 = vmatpush.bf16.msrb.mxu0 %v2744_v3  ;;  %v2120_v3 = vld [vmem:[%s3121_s23 + $0xf0] sm:$0xf]  ;;  %v2117_v8 = vor.u32 %v2684_v1, %v2114_v2 }
  0x51   : > { %1499 = vmatpush.bf16.msrb.mxu2 %v2727_v4  ;;  %v2692_v4 = vld [vmem:[%s3121_s23 + $0x124] sm:$0xf0] }
  0x52   : > { %1528 = vmatpush.bf16.msrb.mxu3 %v2735_v5  ;;  %1586 = vmatpush.bf16.msrb.mxu1 %v2751_v13  ;;  %v2685_v5 = vld [vmem:[%s3121_s23 + $0xf4] sm:$0xf]  ;;  %v2806_v13 = vld [vmem:[%s3652_s1 + $0x2f8] sm:$0xff] }
  0x53   : > { %1557 = vmatpush.bf16.msrb.mxu0 %v2743_v7  ;;  %v2113_v7 = vor.u32 %v2691_v0, %v2112_v63 }
  0x54   : > { %1500 = vmatmul.bf16.vlgmr.msrb.gmra.mxu2 %v2001_v20  ;;  %v2698_v20 = vld [vmem:[%s3121_s23 + $0x15c] sm:$0xf] }
  0x55   : > { %1608 = vmatpush.bf16.msra.mxu2 %v2766_v9  ;;  %1529 = vmatmul.bf16.vlgmr.msrb.gmra.mxu3 %v2005_v21  ;;  %v2121_v9 = vor.u32 %v2692_v4, %v2120_v3  ;;  %v2170_v21 = vld [vmem:[%s3121_s23 + $0x190] sm:$0xf0]  ;;  %v2816_v3 = vld [vmem:[%s3652_s1 + $0x348] sm:$0xff] }
  0x56   : > { %1637 = vmatpush.bf16.msra.mxu3 %v2774_v10  ;;  %1695 = vmatpush.bf16.msra.mxu1 %v2790_v16  ;;  %v2125_v10 = vor.u32 %v2685_v5, %v2122_v6  ;;  %v2805_v16 = vld [vmem:[%s3652_s1 + $0x2f0] sm:$0xff]  ;;  %v2792_v4 = vld [vmem:[%s3652_s1 + $0x288] sm:$0xff] }
  0x57   : > { %1666 = vmatpush.bf16.msra.mxu0 %v2782_v19  ;;  %1587 = vmatmul.bf16.vlgmr.msrb.gmra.mxu1 %v2013_v24  ;;  %v2705_v19 = vld [vmem:[%s3121_s23 + $0x18c] sm:$0xf0]  ;;  %v2699_v24 = vld [vmem:[%s3121_s23 + $0x164] sm:$0xf]  ;;  %v2800_v5 = vld [vmem:[%s3652_s1 + $0x2c8] sm:$0xff] }
  0x58   : > { %1558 = vmatmul.bf16.vlgmr.msrb.gmra.mxu0 %v2009_v22  ;;  %v2176_v22 = vld [vmem:[%s3121_s23 + $0x160] sm:$0xf]  ;;  %v2809_v6 = vld [vmem:[%s3652_s1 + $0x310] sm:$0xff] }
  0x59   : > { %1609 = vmatpush.bf16.msra.mxu2 %v2765_v23  ;;  %v2706_v23 = vld [vmem:[%s3121_s23 + $0x194] sm:$0xf0] }
  0x5a   : > { %1638 = vmatpush.bf16.msra.mxu3 %v2773_v25  ;;  %1696 = vmatpush.bf16.msra.mxu1 %v2789_v27  ;;  %v2178_v25 = vld [vmem:[%s3121_s23 + $0x198] sm:$0xf0]  ;;  %v2173_v27 = vor.u32 %v2698_v20, %v2170_v21  ;;  %v3474_v20 = vld [vmem:[%s3653_s2] ss:$0 sm:$0xff] }
  0x5b   : > { %1667 = vmatpush.bf16.msra.mxu0 %v2781_v26  ;;  %v2169_v26 = vor.u32 %v2705_v19, %v2168_v18 }
  0x5d   : > { %1610 = vmatpush.bf16.msra.mxu2 %v2764_v28  ;;  %v2177_v28 = vor.u32 %v2706_v23, %v2176_v22  ;;  %v2807_v22 = vld [vmem:[%s3652_s1 + $0x300] sm:$0xff] }
  0x5e   : > { %1639 = vmatpush.bf16.msra.mxu3 %v2772_v29  ;;  %1697 = vmatpush.bf16.msra.mxu1 %v2788_v31  ;;  %v2181_v29 = vor.u32 %v2699_v24, %v2178_v25  ;;  %v2804_v31 = vld [vmem:[%s3652_s1 + $0x2e8] sm:$0xff]  ;;  %v2815_v25 = vld [vmem:[%s3652_s1 + $0x340] sm:$0xff] }
  0x5f   : > { %1668 = vmatpush.bf16.msra.mxu0 %v2780_v30  ;;  %v2796_v30 = vld [vmem:[%s3652_s1 + $0x2a8] sm:$0xff] }
  0x61   : > { %1611 = vmatpush.bf16.msra.mxu2 %v2763_v32  ;;  %v2813_v32 = vld [vmem:[%s3652_s1 + $0x330] sm:$0xff] }
  0x62   : > { %1640 = vmatpush.bf16.msra.mxu3 %v2771_v33  ;;  %1698 = vmatpush.bf16.msra.mxu1 %v2787_v35  ;;  %v2795_v33 = vld [vmem:[%s3652_s1 + $0x2a0] sm:$0xff]  ;;  %v2812_v35 = vld [vmem:[%s3652_s1 + $0x328] sm:$0xff] }
  0x63   : > { %1669 = vmatpush.bf16.msra.mxu0 %v2779_v34  ;;  %v2803_v34 = vld [vmem:[%s3652_s1 + $0x2e0] sm:$0xff] }
  0x64   : > { %1505 = vmatmul.bf16.gmra.mxu2 %v2057_v48 }
  0x65   : > { %1612 = vmatpush.bf16.msra.mxu2 %v2762_v41  ;;  %1534 = vmatmul.bf16.gmra.mxu3 %v2061_v49  ;;  %v2024_v41 = vld [vmem:[%s3121_s23 + $0x20] sm:$0xf]  ;;  %v2794_v49 = vld [vmem:[%s3652_s1 + $0x298] sm:$0xff] }
  0x66   : > { %1641 = vmatpush.bf16.msra.mxu3 %v2770_v44  ;;  %1699 = vmatpush.bf16.msra.mxu1 %v2786_v47  ;;  %v2026_v44 = vld [vmem:[%s3121_s23 + $0x58] sm:$0xf0]  ;;  %v2025_v47 = vor.u32 %v2666_v42, %v2024_v41  ;;  %v2192_v41 = vld [vmem:[%s3121_s23 + $0x170] sm:$0xf]  ;;  %v2708_v42 = vld [vmem:[%s3121_s23 + $0x1a4] sm:$0xf0] }
  0x67   : > { %1670 = vmatpush.bf16.msra.mxu0 %v2778_v46  ;;  %1592 = vmatmul.bf16.gmra.mxu1 %v2069_v52  ;;  %v2021_v46 = vor.u32 %v2658_v39, %v2018_v40  ;;  %v2029_v48 = vor.u32 %v2659_v43, %v2026_v44  ;;  %v2793_v52 = vld [vmem:[%s3652_s1 + $0x290] sm:$0xff]  ;;  %v2700_v39 = vld [vmem:[%s3121_s23 + $0x16c] sm:$0xf]  ;;  %v2186_v40 = vld [vmem:[%s3121_s23 + $0x1a0] sm:$0xf0] }
  0x68   : > { %1563 = vmatmul.bf16.gmra.mxu0 %v2065_v50  ;;  %v2802_v50 = vld [vmem:[%s3652_s1 + $0x2d8] sm:$0xff] }
  0x69   : > { %1613 = vmatpush.bf16.msra.mxu2 %v2761_v51  ;;  %v2811_v51 = vld [vmem:[%s3652_s1 + $0x320] sm:$0xff] }
  0x6a   : > { %1642 = vmatpush.bf16.msra.mxu3 %v2769_v53  ;;  %1700 = vmatpush.bf16.msra.mxu1 %v2785_v57  ;;  %v2072_v53 = vld [vmem:[%s3121_s23 + $0x88] sm:$0xf]  ;;  %v2801_v57 = vld [vmem:[%s3652_s1 + $0x2d0] sm:$0xff] }
  0x6b   : > { %1671 = vmatpush.bf16.msra.mxu0 %v2777_v55  ;;  %v2672_v55 = vld [vmem:[%s3121_s23 + $0x8c] sm:$0xf] }
  0x6d   : > { %1614 = vmatpush.bf16.msra.mxu2 %v2760_v54  ;;  %v2679_v54 = vld [vmem:[%s3121_s23 + $0xbc] sm:$0xf0] }
  0x6e   : > { %1643 = vmatpush.bf16.msra.mxu3 %v2768_v56  ;;  %1701 = vmatpush.bf16.msra.mxu1 %v2784_v59  ;;  %v2074_v56 = vld [vmem:[%s3121_s23 + $0xc0] sm:$0xf0]  ;;  %v2080_v59 = vld [vmem:[%s3121_s23 + $0x90] sm:$0xf]  ;;  %v2073_v63 = vor.u32 %v2679_v54, %v2072_v53 }
  0x6f   : > { %1672 = vmatpush.bf16.msra.mxu0 %v2776_v58  ;;  %v2810_v58 = vld [vmem:[%s3652_s1 + $0x318] sm:$0xff]  ;;  %v2077_v0 = vor.u32 %v2672_v55, %v2074_v56 }
  0x71   : > { %1615 = vmatpush.bf16.msra.mxu2 %v2759_v60  ;;  %v2680_v60 = vld [vmem:[%s3121_s23 + $0xc4] sm:$0xf0] }
  0x72   : > { %1644 = vmatpush.bf16.msra.mxu3 %v2767_v61  ;;  %1702 = vmatpush.bf16.msra.mxu1 %v2783_v11  ;;  %v2673_v61 = vld [vmem:[%s3121_s23 + $0x94] sm:$0xf]  ;;  %v2081_v1 = vor.u32 %v2680_v60, %v2080_v59 }
  0x73   : > { %1673 = vmatpush.bf16.msra.mxu0 %v2775_v62  ;;  %v2082_v62 = vld [vmem:[%s3121_s23 + $0xc8] sm:$0xf0]  ;;  %v2130_v11 = vld [vmem:[%s3121_s23 + $0x130] sm:$0xf0] }
  0x74   : > { %1510 = vmatmul.bf16.gmra.mxu2 %v2113_v7  ;;  %v2085_v2 = vor.u32 %v2673_v61, %v2082_v62  ;;  %v2791_v7 = vld [vmem:[%s3652_s1 + $0x280] sm:$0xff] }
  0x75   : > { %1539 = vmatmul.bf16.gmra.mxu3 %v2117_v8  ;;  %1724 = vmatpush.bf16.msrb.mxu2 %v2798_v12  ;;  %v2128_v8 = vld [vmem:[%s3121_s23 + $0xf8] sm:$0xf]  ;;  %v2799_v12 = vld [vmem:[%s3652_s1 + $0x2c0] sm:$0xff] }
  0x76   : > { %1753 = vmatpush.bf16.msrb.mxu3 %v2806_v13  ;;  %1815 = vmatpush.bf16.msrb.mxu1 %v2818_v17  ;;  %v2808_v13 = vld [vmem:[%s3652_s1 + $0x308] sm:$0xff]  ;;  %v2138_v17 = vld [vmem:[%s3121_s23 + $0x138] sm:$0xf0] }
  0x77   : > { %1597 = vmatmul.bf16.gmra.mxu1 %v2125_v10  ;;  %1782 = vmatpush.bf16.msrb.mxu0 %v2814_v15  ;;  %v2686_v10 = vld [vmem:[%s3121_s23 + $0xfc] sm:$0xf]  ;;  %v2694_v15 = vld [vmem:[%s3121_s23 + $0x134] sm:$0xf0] }
  0x78   : > { %1568 = vmatmul.bf16.gmra.mxu0 %v2121_v9  ;;  %v2693_v9 = vld [vmem:[%s3121_s23 + $0x12c] sm:$0xf0]  ;;  %v2133_v19 = vor.u32 %v2686_v10, %v2130_v11  ;;  %v2042_v10 = vld [vmem:[%s3121_s23 + $0x68] sm:$0xf0] }
  0x79   : > { %1725 = vmatpush.bf16.msrb.mxu2 %v2797_v14  ;;  %v2136_v14 = vld [vmem:[%s3121_s23 + $0x100] sm:$0xf]  ;;  %v2129_v18 = vor.u32 %v2693_v9, %v2128_v8  ;;  %v2661_v9 = vld [vmem:[%s3121_s23 + $0x34] sm:$0xf] }
  0x7a   : > { %1754 = vmatpush.bf16.msrb.mxu3 %v2805_v16  ;;  %1816 = vmatpush.bf16.msrb.mxu1 %v2817_v36  ;;  %v2687_v16 = vld [vmem:[%s3121_s23 + $0x104] sm:$0xf]  ;;  %v2137_v21 = vor.u32 %v2694_v15, %v2136_v14  ;;  %v2184_v36 = vld [vmem:[%s3121_s23 + $0x168] sm:$0xf] }
  0x7b   : > { %1783 = vmatpush.bf16.msrb.mxu0 %v2813_v32  ;;  %v2141_v24 = vor.u32 %v2687_v16, %v2138_v17  ;;  %v2045_v17 = vor.u32 %v2661_v9, %v2042_v10 }
  0x7d   : > { %1726 = vmatpush.bf16.msrb.mxu2 %v2796_v30 }
  0x7e   : > { %1755 = vmatpush.bf16.msrb.mxu3 %v2804_v31  ;;  %1817 = vmatpush.bf16.msrb.mxu1 %v2816_v3  ;;  %v2660_v3 = vld [vmem:[%s3121_s23 + $0x2c] sm:$0xf] }
  0x7f   : > { %1784 = vmatpush.bf16.msrb.mxu0 %v2812_v35 }
  0x81   : > { %1727 = vmatpush.bf16.msrb.mxu2 %v2795_v33 }
  0x82   : > { %1756 = vmatpush.bf16.msrb.mxu3 %v2803_v34  ;;  %1818 = vmatpush.bf16.msrb.mxu1 %v2815_v25 }
  0x83   : > { %1785 = vmatpush.bf16.msrb.mxu0 %v2811_v51 }
  0x84   : > { %1515 = vmatmul.bf16.gmra.mxu2 %v2169_v26 }
  0x85   : > { %1544 = vmatmul.bf16.gmra.mxu3 %v2173_v27  ;;  %1728 = vmatpush.bf16.msrb.mxu2 %v2794_v49  ;;  %v2189_v49 = vor.u32 %v2700_v39, %v2186_v40  ;;  %v2098_v39 = vld [vmem:[%s3121_s23 + $0xd8] sm:$0xf0] }
  0x86   : > { %1757 = vmatpush.bf16.msrb.mxu3 %v2802_v50  ;;  %v2193_v50 = vor.u32 %v2708_v42, %v2192_v41 }
  0x87   : > { %1602 = vmatmul.bf16.gmra.mxu1 %v2181_v29  ;;  %1786 = vmatpush.bf16.msrb.mxu0 %v2810_v58 }
  0x88   : > { %1573 = vmatmul.bf16.gmra.mxu0 %v2177_v28 }
  0x89   : > { %1729 = vmatpush.bf16.msrb.mxu2 %v2793_v52 }
  0x8a   : > { %1758 = vmatpush.bf16.msrb.mxu3 %v2801_v57 }
  0x8b   : > { %1787 = vmatpush.bf16.msrb.mxu0 %v2809_v6  ;;  %v2668_v6 = vld [vmem:[%s3121_s23 + $0x64] sm:$0xf0] }
  0x8d   : > { %1730 = vmatpush.bf16.msrb.mxu2 %v2792_v4  ;;  %v2034_v4 = vld [vmem:[%s3121_s23 + $0x60] sm:$0xf0] }
  0x8e   : > { %1759 = vmatpush.bf16.msrb.mxu3 %v2800_v5  ;;  %v2040_v5 = vld [vmem:[%s3121_s23 + $0x30] sm:$0xf] }
  0x8f   : > { %1788 = vmatpush.bf16.msrb.mxu0 %v2808_v13  ;;  %v2037_v13 = vor.u32 %v2660_v3, %v2034_v4  ;;  %v2041_v14 = vor.u32 %v2668_v6, %v2040_v5  ;;  %v2689_v4 = vld [vmem:[%s3121_s23 + $0x114] sm:$0xf]  ;;  %v2154_v5 = vld [vmem:[%s3121_s23 + $0x148] sm:$0xf0] }
  0x91   : > { %1731 = vmatpush.bf16.msrb.mxu2 %v2791_v7 }
  0x92   : > { %1760 = vmatpush.bf16.msrb.mxu3 %v2799_v12 }
  0x93   : > { %1789 = vmatpush.bf16.msrb.mxu0 %v2807_v22 }
  0x94   : > { %1616 = vmatmul.bf16.vlgmr.msra.gmra.mxu2 %v2017_v45  ;;  %v2701_v45 = vld [vmem:[%s3121_s23 + $0x174] sm:$0xf] }
  0x95   : > { %1645 = vmatmul.bf16.vlgmr.msra.gmra.mxu3 %v2021_v46  ;;  %v2194_v46 = vld [vmem:[%s3121_s23 + $0x1a8] sm:$0xf0] }
  0x96   : > { %v2197_v53 = vor.u32 %v2701_v45, %v2194_v46 }
  0x97   : > { %1703 = vmatmul.bf16.vlgmr.msra.gmra.mxu1 %v2029_v48  ;;  %v2185_v48 = vor.u32 %v2707_v38, %v2184_v36  ;;  %v2675_v38 = vld [vmem:[%s3121_s23 + $0xa4] sm:$0xf] }
  0x98   : > { %1674 = vmatmul.bf16.vlgmr.msra.gmra.mxu0 %v2025_v47  ;;  %v2101_v45 = vor.u32 %v2675_v38, %v2098_v39 }
  0xa4   : > { %1621 = vmatmul.bf16.gmra.mxu2 %v2073_v63 }
  0xa5   : > { %1650 = vmatmul.bf16.gmra.mxu3 %v2077_v0  ;;  %v2032_v0 = vld [vmem:[%s3121_s23 + $0x28] sm:$0xf] }
  0xa7   : > { %1708 = vmatmul.bf16.gmra.mxu1 %v2085_v2  ;;  %v2667_v2 = vld [vmem:[%s3121_s23 + $0x5c] sm:$0xf0] }
  0xa8   : > { %1679 = vmatmul.bf16.gmra.mxu0 %v2081_v1  ;;  %v2033_v12 = vor.u32 %v2667_v2, %v2032_v0 }
  0xb1   : > { %v1443_v23 = vpop.f32.mrf.mxu0 }
  0xb2   : > { %v1444_v26 = vadd.f32 %v3474_v20, %v1443_v23 }
  0xb4   : > { %v1472_v27 = vpop.f32.mrf.mxu1  ;;  %1626 = vmatmul.bf16.gmra.mxu2 %v2129_v18 }
  0xb5   : > { %1655 = vmatmul.bf16.gmra.mxu3 %v2133_v19  ;;  %v3483_v28 = vadd.f32 %v1472_v27, %v1444_v26  ;;  %v2088_v26 = vld [vmem:[%s3121_s23 + $0x98] sm:$0xf]  ;;  %v2681_v27 = vld [vmem:[%s3121_s23 + $0xcc] sm:$0xf0] }
  0xb6   : > { %v2089_v41 = vor.u32 %v2681_v27, %v2088_v26  ;;  %v2208_v26 = vld [vmem:[%s3121_s23 + $0x180] sm:$0xf]  ;;  %v2710_v27 = vld [vmem:[%s3121_s23 + $0x1b4] sm:$0xf0] }
  0xb7   : > { %1713 = vmatmul.bf16.gmra.mxu1 %v2141_v24  ;;  %v1453_v29 = vpop.f32.mrf.mxu2 }
  0xb8   : > { %1684 = vmatmul.bf16.gmra.mxu0 %v2137_v21  ;;  %v1482_v30 = vpop.f32.mrf.mxu3  ;;  %v1454_v31 = vadd.f32 %v3474_v20, %v1453_v29  ;;  %v2674_v29 = vld [vmem:[%s3121_s23 + $0x9c] sm:$0xf] }
  0xb9   : > { %v1445_v33 = vpop.f32.mrf.mxu0 }
  0xba   : > { %v3486_v32 = vadd.f32 %v1482_v30, %v1454_v31  ;;  %v1446_v34 = vadd.f32 %v3474_v20, %v1445_v33  ;;  %v2090_v30 = vld [vmem:[%s3121_s23 + $0xd0] sm:$0xf0]  ;;  %v2096_v31 = vld [vmem:[%s3121_s23 + $0xa0] sm:$0xf]  ;;  %v2682_v33 = vld [vmem:[%s3121_s23 + $0xd4] sm:$0xf0] }
  0xbb   : > { %v2097_v42 = vor.u32 %v2682_v33, %v2096_v31  ;;  %v2703_v33 = vld [vmem:[%s3121_s23 + $0x184] sm:$0xf] }
  0xbc   : > { %v1474_v35 = vpop.f32.mrf.mxu1 }
  0xbd   : > { %v3490_v37 = vadd.f32 %v1474_v35, %v1446_v34 }
  0xbf   : > { %v1455_v43 = vpop.f32.mrf.mxu2 }
  0xc0   : > { %v1484_v44 = vpop.f32.mrf.mxu3  ;;  %v1456_v47 = vadd.f32 %v3474_v20, %v1455_v43 }
  0xc1   : > { %v1448_v52 = vpop.f32.mrf.mxu0 }
  0xc2   : > { %v3500_v51 = vadd.f32 %v1484_v44, %v1456_v47  ;;  %v1449_v54 = vadd.f32 %v3474_v20, %v1448_v52 }
  0xc4   : > { %v1477_v55 = vpop.f32.mrf.mxu1  ;;  %1631 = vmatmul.bf16.gmra.mxu2 %v2185_v48 }
  0xc5   : > { %1660 = vmatmul.bf16.gmra.mxu3 %v2189_v49  ;;  %v3503_v56 = vadd.f32 %v1477_v55, %v1449_v54 }
  0xc7   : > { %1718 = vmatmul.bf16.gmra.mxu1 %v2197_v53  ;;  %v1458_v57 = vpop.f32.mrf.mxu2 }
  0xc8   : > { %1689 = vmatmul.bf16.gmra.mxu0 %v2193_v50  ;;  %v1487_v58 = vpop.f32.mrf.mxu3  ;;  %v1459_v59 = vadd.f32 %v3474_v20, %v1458_v57  ;;  %v2144_v57 = vld [vmem:[%s3121_s23 + $0x108] sm:$0xf] }
  0xc9   : > { %v1450_v61 = vpop.f32.mrf.mxu0 }
  0xca   : > { %v3506_v60 = vadd.f32 %v1487_v58, %v1459_v59  ;;  %v1451_v62 = vadd.f32 %v3474_v20, %v1450_v61  ;;  %v2695_v58 = vld [vmem:[%s3121_s23 + $0x13c] sm:$0xf0]  ;;  %v2688_v59 = vld [vmem:[%s3121_s23 + $0x10c] sm:$0xf]  ;;  %v2146_v61 = vld [vmem:[%s3121_s23 + $0x140] sm:$0xf0] }
  0xcc   : > { %v1479_v63 = vpop.f32.mrf.mxu1 }
  0xcd   : > { %v3510_v1 = vadd.f32 %v1479_v63, %v1451_v62  ;;  %v2152_v62 = vld [vmem:[%s3121_s23 + $0x110] sm:$0xf]  ;;  %v2696_v63 = vld [vmem:[%s3121_s23 + $0x144] sm:$0xf0] }
  0xcf   : > { %v1460_v7 = vpop.f32.mrf.mxu2 }
  0xd0   : > { %v1489_v8 = vpop.f32.mrf.mxu3  ;;  %v1461_v11 = vadd.f32 %v3474_v20, %v1460_v7  ;;  %v2145_v7 = vor.u32 %v2695_v58, %v2144_v57 }
  0xd2   : > { %v3520_v15 = vadd.f32 %v1489_v8, %v1461_v11  ;;  %v2153_v8 = vor.u32 %v2696_v63, %v2152_v62  ;;  %v2157_v11 = vor.u32 %v2689_v4, %v2154_v5 }
  0xd4   : > { %v1588_v18 = vpop.f32.mrf.mxu1  ;;  %1732 = vmatmul.bf16.vlgmr.msrb.gmra.mxu2 %v2033_v12 }
  0xd5   : > { %v1559_v16 = vpop.f32.mrf.mxu0  ;;  %1761 = vmatmul.bf16.vlgmr.msrb.gmra.mxu3 %v2037_v13 }
  0xd7   : > { %2646 = vmatmul.msk.bf16.vlgmr.msrb.gmra.mxu1 %vm1421_vm0, %v2045_v17  ;;  %v1501_v19 = vpop.f32.mrf.mxu2 }
  0xd8   : > { %1790 = vmatmul.bf16.vlgmr.msrb.gmra.mxu0 %v2041_v14  ;;  %v1530_v20 = vpop.f32.mrf.mxu3  ;;  %v1502_v21 = vadd.f32 %v1501_v19, %v3483_v28  ;;  %v2093_v28 = vor.u32 %v2674_v29, %v2090_v30 }
  0xda   : > { %v1531_v22 = vadd.f32 %v1530_v20, %v1502_v21 }
  0xdc   : > { %v1590_v24 = vpop.f32.mrf.mxu1  ;;  %v1560_v25 = vadd.f32 %v1559_v16, %v1531_v22  ;;  %v2200_v22 = vld [vmem:[%s3121_s23 + $0x178] sm:$0xf] }
  0xdd   : > { %v1561_v23 = vpop.f32.mrf.mxu0 }
  0xde   : > { %v3530_v34 = vadd.f32 %v1588_v18, %v1560_v25  ;;  %v2202_v25 = vld [vmem:[%s3121_s23 + $0x1b0] sm:$0xf0] }
  0xdf   : > { %v1503_v35 = vpop.f32.mrf.mxu2 }
  0xe0   : > { %v1532_v36 = vpop.f32.mrf.mxu3  ;;  %v1504_v40 = vadd.f32 %v1503_v35, %v3490_v37  ;;  %v2210_v35 = vld [vmem:[%s3121_s23 + $0x1b8] sm:$0xf0] }
  0xe2   : > { %v1533_v43 = vadd.f32 %v1532_v36, %v1504_v40 }
  0xe4   : > { %v1593_v46 = vpop.f32.mrf.mxu1  ;;  %v1562_v47 = vadd.f32 %v1561_v23, %v1533_v43  ;;  %1737 = vmatmul.bf16.gmra.mxu2 %v2089_v41  ;;  %v2709_v23 = vld [vmem:[%s3121_s23 + $0x1ac] sm:$0xf0] }
  0xe5   : > { %v1564_v44 = vpop.f32.mrf.mxu0  ;;  %1766 = vmatmul.bf16.gmra.mxu3 %v2093_v28  ;;  %v2201_v38 = vor.u32 %v2709_v23, %v2200_v22  ;;  %v2213_v28 = vor.u32 %v2703_v33, %v2210_v35 }
  0xe6   : > { %v3536_v37 = vadd.f32 %v1590_v24, %v1562_v47  ;;  %v2702_v24 = vld [vmem:[%s3121_s23 + $0x17c] sm:$0xf]  ;;  %s202_s23 = sand.u32 1, %s2980_s13  }
  0xe7   : > { %2647 = vmatmul.msk.bf16.gmra.mxu1 %vm1421_vm0, %v2101_v45  ;;  %v1506_v48 = vpop.f32.mrf.mxu2  ;;  %v2205_v39 = vor.u32 %v2702_v24, %v2202_v25  ;;  %s1987_s19 = sshll.u32 %s202_s23, 5  ;;  %s1865_s15 = scalar_lea.sflag [#allocation3], %s202_s23 }
  0xe8   : > { %1795 = vmatmul.bf16.gmra.mxu0 %v2097_v42  ;;  %v1535_v49 = vpop.f32.mrf.mxu3  ;;  %v1507_v50 = vadd.f32 %v1506_v48, %v3503_v56  ;;  %v2149_v56 = vor.u32 %v2688_v59, %v2146_v61  ;;  %s3595_s21 = scalar_lea.vmem [#allocation2], %s1987_s19 }
  0xe9   : > { %s1878_s29 = sshll.u32 %s3595_s21, 4  ;;  %s1879_s29 = int_to_ptr.vmem [resolvable:$true] %s1878_s29 }
  0xea   : > { %v1536_v52 = vadd.f32 %v1535_v49, %v1507_v50 }
  0xec   : > { %v1595_v54 = vpop.f32.mrf.mxu1  ;;  %v1565_v55 = vadd.f32 %v1564_v44, %v1536_v52 }
  0xed   : > { %v1566_v53 = vpop.f32.mrf.mxu0 }
  0xee   : > { %v3545_v0 = vadd.f32 %v1593_v46, %v1565_v55 }
  0xef   : > { %v1508_v2 = vpop.f32.mrf.mxu2 }
  0xf0   : > { %v1537_v3 = vpop.f32.mrf.mxu3  ;;  %v1509_v6 = vadd.f32 %v1508_v2, %v3510_v1 }
  0xf2   : > { %v1538_v9 = vadd.f32 %v1537_v3, %v1509_v6 }
  0xf4   : > { %v1598_v12 = vpop.f32.mrf.mxu1  ;;  %v1567_v13 = vadd.f32 %v1566_v53, %v1538_v9  ;;  %1742 = vmatmul.bf16.gmra.mxu2 %v2145_v7 }
  0xf5   : > { %v1569_v10 = vpop.f32.mrf.mxu0  ;;  %1771 = vmatmul.bf16.gmra.mxu3 %v2149_v56 }
  0xf6   : > { %v3551_v1 = vadd.f32 %v1595_v54, %v1567_v13 }
  0xf7   : > { %2648 = vmatmul.msk.bf16.gmra.mxu1 %vm1421_vm0, %v2157_v11  ;;  %v1511_v14 = vpop.f32.mrf.mxu2 }
  0xf8   : > { %1800 = vmatmul.bf16.gmra.mxu0 %v2153_v8  ;;  %v1540_v16 = vpop.f32.mrf.mxu3  ;;  %v1512_v17 = vadd.f32 %v1511_v14, %v3486_v32  ;;  %v2209_v32 = vor.u32 %v2710_v27, %v2208_v26 }
  0xfa   : > { %v1541_v18 = vadd.f32 %v1540_v16, %v1512_v17 }
  0xfc   : > { %v1600_v20 = vpop.f32.mrf.mxu1  ;;  %v1570_v21 = vadd.f32 %v1569_v10, %v1541_v18 }
  0xfd   : > { %v1571_v19 = vpop.f32.mrf.mxu0 }
  0xfe   : > { %v1599_v29 = vadd.f32 %v1598_v12, %v1570_v21 }
  0xff   : > { %v1513_v30 = vpop.f32.mrf.mxu2 }
 0x100   : > { %v1542_v31 = vpop.f32.mrf.mxu3  ;;  %v1514_v36 = vadd.f32 %v1513_v30, %v3500_v51 }
 0x102   : > { %v1543_v40 = vadd.f32 %v1542_v31, %v1514_v36 }
 0x104   : > { %v1603_v42 = vpop.f32.mrf.mxu1  ;;  %v1572_v43 = vadd.f32 %v1571_v19, %v1543_v40  ;;  %1747 = vmatmul.bf16.gmra.mxu2 %v2201_v38 }
 0x105   : > { %v1574_v41 = vpop.f32.mrf.mxu0  ;;  %1776 = vmatmul.bf16.gmra.mxu3 %v2205_v39 }
 0x106   : > { %v3564_v44 = vadd.f32 %v1600_v20, %v1572_v43 }
 0x107   : > { %2649 = vmatmul.msk.bf16.gmra.mxu1 %vm1421_vm0, %v2213_v28  ;;  %v1516_v45 = vpop.f32.mrf.mxu2 }
 0x108   : > { %1805 = vmatmul.bf16.gmra.mxu0 %v2209_v32  ;;  %v1545_v46 = vpop.f32.mrf.mxu3  ;;  %v1517_v47 = vadd.f32 %v1516_v45, %v3506_v60 }
 0x10a   : > { %v1546_v51 = vadd.f32 %v1545_v46, %v1517_v47 }
 0x10c   : > { %v1605_v49 = vpop.f32.mrf.mxu1  ;;  %v1575_v50 = vadd.f32 %v1574_v41, %v1546_v51 }
 0x10d   : > { %v1576_v48 = vpop.f32.mrf.mxu0 }
 0x10e   : > { %v1604_v52 = vadd.f32 %v1603_v42, %v1575_v50 }
 0x10f   : > { %v1518_v53 = vpop.f32.mrf.mxu2 }
 0x110   : > { %v1547_v54 = vpop.f32.mrf.mxu3  ;;  %v1519_v55 = vadd.f32 %v1518_v53, %v3520_v15 }
 0x112   : > { %v1548_v57 = vadd.f32 %v1547_v54, %v1519_v55 }
 0x114   : > { %v1704_v59 = vpop.f32.mrf.mxu1  ;;  %v1577_v61 = vadd.f32 %v1576_v48, %v1548_v57 }
 0x115   : > { %v1675_v58 = vpop.f32.mrf.mxu0 }
 0x116   : > { %v3568_v62 = vadd.f32 %v1605_v49, %v1577_v61 }
 0x117   : > { %v1617_v63 = vpop.f32.mrf.mxu2 }
 0x118   : > { %v1646_v2 = vpop.f32.mrf.mxu3  ;;  %v1618_v3 = vadd.f32 %v1617_v63, %v3530_v34 }
 0x11a   : > { %v1647_v60 = vadd.f32 %v1646_v2, %v1618_v3 }
 0x11c   : > { %v1706_v5 = vpop.f32.mrf.mxu1  ;;  %v1676_v6 = vadd.f32 %v1675_v58, %v1647_v60 }
 0x11d   : > { %v1677_v4 = vpop.f32.mrf.mxu0 }
 0x11e   : > { %v1705_v7 = vadd.f32 %v1704_v59, %v1676_v6 }
 0x11f   : > { %v1619_v56 = vpop.f32.mrf.mxu2 }
 0x120   : > { %v1648_v8 = vpop.f32.mrf.mxu3  ;;  %v1620_v46 = vadd.f32 %v1619_v56, %v3536_v37 }
 0x122   : > { %v1649_v48 = vadd.f32 %v1648_v8, %v1620_v46 }
 0x124   : > { %v1709_v10 = vpop.f32.mrf.mxu1  ;;  %v1678_v53 = vadd.f32 %v1677_v4, %v1649_v48 }
 0x125   : > { %v1680_v9 = vpop.f32.mrf.mxu0 }
 0x126   : > { %v1707_v58 = vadd.f32 %v1706_v5, %v1678_v53 }
 0x127   : > { %v1622_v15 = vpop.f32.mrf.mxu2 }
 0x128   : > { %v1651_v11 = vpop.f32.mrf.mxu3  ;;  %v1623_v12 = vadd.f32 %v1622_v15, %v3545_v0 }
 0x12a   : > { %v1652_v13 = vadd.f32 %v1651_v11, %v1623_v12 }
 0x12c   : > { %v3572_v16 = vpop.f32.mrf.mxu1  ;;  %v1681_v17 = vadd.f32 %v1680_v9, %v1652_v13 }
 0x12d   : > { %v1682_v14 = vpop.f32.mrf.mxu0 }
 0x12e   : > { %v1710_v18 = vadd.f32 %v1709_v10, %v1681_v17 }
 0x12f   : > { %v1624_v34 = vpop.f32.mrf.mxu2 }
 0x130   : > { %v1653_v19 = vpop.f32.mrf.mxu3  ;;  %v1625_v3 = vadd.f32 %v1624_v34, %v3551_v1 }
 0x132   : > { %v1654_v9 = vadd.f32 %v1653_v19, %v1625_v3 }
 0x134   : > { %v1714_v21 = vpop.f32.mrf.mxu1  ;;  %v1683_v12 = vadd.f32 %v1682_v14, %v1654_v9 }
 0x135   : > { %v1685_v20 = vpop.f32.mrf.mxu0 }
 0x137   : > { %v1627_v22 = vpop.f32.mrf.mxu2 }
 0x138   : > { %v1656_v23 = vpop.f32.mrf.mxu3  ;;  %v1628_v24 = vadd.f32 %v1627_v22, %v1599_v29 }
 0x13a   : > { %v1657_v25 = vadd.f32 %v1656_v23, %v1628_v24 }
 0x13c   : > { %v3576_v27 = vpop.f32.mrf.mxu1  ;;  %v1686_v30 = vadd.f32 %v1685_v20, %v1657_v25  ;;  %v1712_v20 = vadd.f32 %v3572_v16, %v1683_v12 }
 0x13d   : > { %v3574_v26 = vpop.f32.mrf.mxu0 }
 0x13e   : > { %v3578_v0 = vadd.f32 %v1714_v21, %v1686_v30 }
 0x13f   : > { %v1629_v31 = vpop.f32.mrf.mxu2 }
 0x140   : > { %v1658_v33 = vpop.f32.mrf.mxu3  ;;  %v1630_v24 = vadd.f32 %v1629_v31, %v3564_v44 }
 0x144   : > { %v1719_v36 = vpop.f32.mrf.mxu1 }
 0x145   : > { %v1690_v35 = vpop.f32.mrf.mxu0 }
 0x147   : > { %v1632_v38 = vpop.f32.mrf.mxu2 }
 0x148   : > { %v1661_v39 = vpop.f32.mrf.mxu3  ;;  %v1633_v32 = vadd.f32 %v1632_v38, %v1604_v52 }
 0x14a   : > { %v1662_v40 = vadd.f32 %v1661_v39, %v1633_v32 }
 0x14c   : > { %v3582_v28 = vpop.f32.mrf.mxu1  ;;  %v1691_v29 = vadd.f32 %v1690_v35, %v1662_v40  ;;  %v1659_v35 = vadd.f32 %v1658_v33, %v1630_v24 }
 0x14d   : > { %v3580_v41 = vpop.f32.mrf.mxu0 }
 0x14e   : > { %v3584_v42 = vadd.f32 %v1719_v36, %v1691_v29  ;;  %v1688_v46 = vadd.f32 %v3574_v26, %v1659_v35 }
 0x14f   : > { %v3586_v43 = vpop.f32.mrf.mxu2 }
 0x150   : > { %v3588_v45 = vpop.f32.mrf.mxu3  ;;  %v1717_v44 = vadd.f32 %v3576_v27, %v1688_v46  ;;  %v1635_v53 = vadd.f32 %v3586_v43, %v3568_v62 }
 0x152   : > { %v1664_v26 = vadd.f32 %v3588_v45, %v1635_v53 }
 0x154   : > { %v1820_v51 = vpop.f32.mrf.mxu1  ;;  %v1693_v3 = vadd.f32 %v3580_v41, %v1664_v26 }
 0x155   : > { %v1791_v47 = vpop.f32.mrf.mxu0 }
 0x156   : > { %v1722_v43 = vadd.f32 %v3582_v28, %v1693_v3 }
 0x157   : > { %v1733_v49 = vpop.f32.mrf.mxu2 }
 0x158   : > { %v1762_v50 = vpop.f32.mrf.mxu3  ;;  %v1734_v52 = vadd.f32 %v1733_v49, %v1705_v7 }
 0x15a   : > { %v1763_v57 = vadd.f32 %v1762_v50, %v1734_v52 }
 0x15c   : > { %v1822_v55 = vpop.f32.mrf.mxu1  ;;  %v1792_v63 = vadd.f32 %v1791_v47, %v1763_v57 }
 0x15d   : > { %v1793_v54 = vpop.f32.mrf.mxu0 }
 0x15e   : > { %v1821_v56 = vadd.f32 %v1820_v51, %v1792_v63 }
 0x15f   : > { %v1735_v59 = vpop.f32.mrf.mxu2 }
 0x160   : > { %v1764_v61 = vpop.f32.mrf.mxu3  ;;  %v1736_v2 = vadd.f32 %v1735_v59, %v1707_v58  ;;  %v1840_v15 = vmax.f32 %v1821_v56, 0.0 }
 0x162   : > { %v1765_v37 = vadd.f32 %v1764_v61, %v1736_v2 }
 0x164   : > { %v1825_v6 = vpop.f32.mrf.mxu1  ;;  %v1794_v8 = vadd.f32 %v1793_v54, %v1765_v37 }
 0x165   : > { %v1796_v60 = vpop.f32.mrf.mxu0 }
 0x166   : > { %v1823_v4 = vadd.f32 %v1822_v55, %v1794_v8 }
 0x167   : > { %v1738_v7 = vpop.f32.mrf.mxu2 }
 0x168   : > { %v1767_v10 = vpop.f32.mrf.mxu3  ;;  %v1841_v5 = vmax.f32 %v1823_v4, 0.0  ;;  %v1739_v11 = vadd.f32 %v1738_v7, %v1710_v18 }
 0x16a   : > { %v2823_v13 = vpack.c.bf16 %v1841_v5, %v1840_v15  ;;  %v1768_v1 = vadd.f32 %v1767_v10, %v1739_v11 }
 0x16c   : > { %2824 = vst [vmem:[%s3595_s21] sm:$0xff] %v2823_v13   ;;  %v1827_v34 = vpop.f32.mrf.mxu1  ;;  %v1797_v22 = vadd.f32 %v1796_v60, %v1768_v1 }
 0x16d   : > { %v1798_v17 = vpop.f32.mrf.mxu0 }
 0x16e   : > { %v1826_v18 = vadd.f32 %v1825_v6, %v1797_v22 }
 0x16f   : > { %v1740_v19 = vpop.f32.mrf.mxu2 }
 0x170   : > { %v1769_v21 = vpop.f32.mrf.mxu3  ;;  %v1741_v23 = vadd.f32 %v1740_v19, %v1712_v20  ;;  %v1842_v40 = vmax.f32 %v1826_v18, 0.0 }
 0x172   : > { %v1770_v25 = vadd.f32 %v1769_v21, %v1741_v23 }
 0x174   : > { %v1799_v14 = vadd.f32 %v1798_v17, %v1770_v25  ;;  %v1830_v38 = vpop.f32.mrf.mxu1 }
 0x175   : > { %v1801_v30 = vpop.f32.mrf.mxu0 }
 0x176   : > { %v1828_v36 = vadd.f32 %v1827_v34, %v1799_v14 }
 0x177   : > { %v1743_v39 = vpop.f32.mrf.mxu2 }
 0x178   : > { %v1772_v32 = vpop.f32.mrf.mxu3  ;;  %v1843_v29 = vmax.f32 %v1828_v36, 0.0  ;;  %v1744_v16 = vadd.f32 %v1743_v39, %v3578_v0 }
 0x17a   : > { %v2828_v47 = vpack.c.bf16 %v1843_v29, %v1842_v40  ;;  %v1773_v51 = vadd.f32 %v1772_v32, %v1744_v16 }
 0x17c   : > { %2840 = vst [vmem:[%s3595_s21 + $0x8] sm:$0xff] %v2828_v47   ;;  %v1802_v50 = vadd.f32 %v1801_v30, %v1773_v51  ;;  %v1832_v52 = vpop.f32.mrf.mxu1 }
 0x17d   : > { %v1803_v48 = vpop.f32.mrf.mxu0 }
 0x17e   : > { %v1831_v55 = vadd.f32 %v1830_v38, %v1802_v50 }
 0x17f   : > { %v1745_v31 = vpop.f32.mrf.mxu2 }
 0x180   : > { %v1774_v49 = vpop.f32.mrf.mxu3  ;;  %v1746_v33 = vadd.f32 %v1745_v31, %v1717_v44  ;;  %v1844_v61 = vmax.f32 %v1831_v55, 0.0 }
 0x182   : > { %v1775_v54 = vadd.f32 %v1774_v49, %v1746_v33 }
 0x184   : > { %v1804_v0 = vadd.f32 %v1803_v48, %v1775_v54  ;;  %v1835_v60 = vpop.f32.mrf.mxu1 }
 0x185   : > { %v1806_v2 = vpop.f32.mrf.mxu0 }
 0x186   : > { %v1833_v57 = vadd.f32 %v1832_v52, %v1804_v0 }
 0x187   : > { %v1748_v58 = vpop.f32.mrf.mxu2 }
 0x188   : > { %v1777_v59 = vpop.f32.mrf.mxu3  ;;  %v1845_v27 = vmax.f32 %v1833_v57, 0.0  ;;  %v1749_v63 = vadd.f32 %v1748_v58, %v3584_v42 }
 0x18a   : > { %v2833_v37 = vpack.c.bf16 %v1845_v27, %v1844_v61  ;;  %v1778_v62 = vadd.f32 %v1777_v59, %v1749_v63 }
 0x18c   : > { %2841 = vst [vmem:[%s3595_s21 + $0x10] sm:$0xff] %v2833_v37   ;;  %v1807_v45 = vadd.f32 %v1806_v2, %v1778_v62  ;;  %v1837_v7 = vpop.f32.mrf.mxu1 }
 0x18d   : > { %v1808_v4 = vpop.f32.mrf.mxu0 }
 0x18e   : > { %v1836_v41 = vadd.f32 %v1835_v60, %v1807_v45 }
 0x18f   : > { %v1750_v6 = vpop.f32.mrf.mxu2 }
 0x190   : > { %v1751_v56 = vadd.f32 %v1750_v6, %v1722_v43  ;;  %v1779_v8 = vpop.f32.mrf.mxu3  ;;  %v1846_v28 = vmax.f32 %v1836_v41, 0.0 }
 0x192   : > { %v1780_v9 = vadd.f32 %v1779_v8, %v1751_v56 }
 0x194   : > { %v1809_v42 = vadd.f32 %v1808_v4, %v1780_v9 }
 0x196   : > { %v1838_v10 = vadd.f32 %v1837_v7, %v1809_v42 }
 0x198   : > { %v1847_v15 = vmax.f32 %v1838_v10, 0.0 }
 0x19a   : > { %v2838_v5 = vpack.c.bf16 %v1847_v15, %v1846_v28 }
 0x19c   : > { %2842 = vst [vmem:[%s3595_s21 + $0x18] sm:$0xff] %v2838_v5  }
 0x19d   : > { %2945 = shalt.err (!%p2942_p5)
}
 0x19e   : > { %s2998_s18 = smov 64   ;;  %s2999_s23 = smov 4  }
 0x19f   : > { %2860 = dma.vmem_to_hbm [thread:$0]  (%p3060_p4), %s1879_s29, 512, %s1881_s30, %s1865_s15, %s2998_s18, %s2998_s18, %s2999_s23  }
 0x1a0 PF: > { %p2866_p6 = scmp.ge.s32.totalorder %s2996_s17, 2  ;;  %s1895_s19 = sand.u32 1, %s2976_s12  }
 0x1a1   : > { %s1896_s21 = scalar_lea.sflag [#allocation3], %s1895_s19 }
 0x1a2   : > { %p2863_p7 = pnand %p2866_p6, %p3067_p8 }
 0x1a4   : > { %p2864_p9 = pneg %p2863_p7 }
 0x1a6   : > { %2971 = dma.done.wait (%p2864_p9), %s1896_s21, 512  }
 0x1a7   : > { %2973 = vsyncadd (%p2864_p9), %s1896_s21, 4294966784  ;;  %s16_s17 = sadd.s32 1, %s2996_s17   ;;  %s3657_s12 = smov %s2980_s13 }
 0x1a8   : > { %p13_p10 = scmp.ge.s32.totalorder %s16_s17, 4   ;;  %s3658_s13 = smov %s2984_s14 }
 0x1a9   : > { %s3659_s14 = smov %s3073_s25  ;;  %s3660_s15 = smov %s2992_s16 }
 0x1aa   : > { %s3661_s16 = smov %s3663_s20  ;;  %15 = sbr.rel (!%p13_p10) target bundleno = 4 (0x4), region = 73 }
 0x1af   :  { %1902 = vsyncpa [#allocation3], 1 }
 0x1b0   :  { %1904 = vsyncpa [#allocation3 + $0x1], 1 }

</bundles_post_ra>
